<compile_context>
chip_gen: v7x
topology: tpu7x:2x2x1
jax: 0.10.0
libtpu: 0.0.40
codegen_flags: <defaults>
</compile_context>

<pallas_src>
import functools

import jax
import jax.numpy as jnp
from jax.experimental import pallas as pl
from jax.experimental.pallas import tpu as pltpu


def _focal_loss_kernel(logits_ref, target_ref, out_ref, *,
                       gamma, alpha, epsilon, batch, block_b):
    # logits_ref: (TB, C) input dtype, target_ref: (TB, 1) int32, out_ref: (TB, 1) f32
    x = logits_ref[...].astype(jnp.float32)                       # (TB, C) f32
    tb, c = x.shape
    tgt = target_ref[...]                                         # (TB, 1) int32

    # Single (TB, C) transcendental pass: softmax numerator terms.
    m = jnp.max(x, axis=-1, keepdims=True)                        # (TB, 1)
    e = jnp.exp(x - m)                                            # (TB, C); x dies here
    s = jnp.sum(e, axis=-1, keepdims=True)                        # (TB, 1)

    # Gather the target-class term from `e` (compare + select + masked reduce;
    # no (TB, C) float one-hot, no second exp).
    cls = jax.lax.broadcasted_iota(jnp.int32, (tb, c), 1)
    e_t = jnp.sum(jnp.where(cls == tgt, e, 0.0), axis=-1, keepdims=True)  # (TB, 1)
    p_t = e_t / s                                                 # (TB, 1)

    # (1 - p)^gamma; clamp guards fractional-gamma pow against tiny negatives.
    one_minus = jnp.maximum(1.0 - p_t, 0.0)                       # (TB, 1)
    if float(gamma) == 2.0:
        w = one_minus * one_minus                                 # default: one VPU mul
    elif float(gamma) == float(int(gamma)) and 0 <= int(gamma) <= 16:
        w = one_minus ** int(gamma)                               # integer pow -> mults
    else:
        w = jnp.power(one_minus, gamma)                           # only (TB, 1) elements

    per_sample = -alpha * w * jnp.log(p_t + epsilon)              # (TB, 1)

    # Select (NOT multiply) so NaN/Inf from garbage rows in the ragged last
    # block are safely discarded; padded output rows are never stored anyway.
    row = pl.program_id(0) * block_b + jax.lax.broadcasted_iota(jnp.int32, (tb, 1), 0)
    out_ref[...] = jnp.where(row < batch, per_sample, 0.0)

    # TODO(synk): 'sigmoid' activation_type path (multi-hot targets) is not
    # exercised by the default config; it would be a separate elementwise kernel.


def _choose_block_b(b, c, itemsize):
    """Pick the batch-tile size by bytes, not rows."""
    b, c, itemsize = int(b), int(c), int(itemsize)
    lanes = 128
    # VMEM tiles pad the last dim to a multiple of 128 lanes (big factor for small C).
    c_pad = ((c + lanes - 1) // lanes) * lanes
    # Per-row VMEM bytes: double-buffered input tile + two live f32 (TB, C)
    # temps in the kernel (the f32 cast `x` and `e = exp(x - m)`).
    bytes_per_row = c_pad * (2 * itemsize + 2 * 4)
    budget = 32 * 1024 * 1024                    # working-set target (limit is 48 MiB)
    max_tb = max(8, (budget // bytes_per_row) // 8 * 8)
    # Keep >= ~4 grid steps when the batch allows it (both v7x TCs get work,
    # pipeline stays full), and never exceed the (8-rounded) batch.
    tb_quarter = max(8, (((b + 3) // 4) + 7) // 8 * 8)
    b_up = max(8, ((b + 7) // 8) * 8)
    return max(8, min(max_tb, tb_quarter, b_up))


def focal_loss(logits, target, *, gamma=2.0, alpha=0.25, epsilon=1e-9):
    b, c = logits.shape
    itemsize = jnp.dtype(logits.dtype).itemsize
    tb = _choose_block_b(b, c, itemsize)
    num_tiles = pl.cdiv(b, tb)

    tgt2d = target.reshape(b, 1).astype(jnp.int32)

    cost = pl.CostEstimate(
        flops=6 * b * c,
        transcendentals=b * c + 2 * b,
        bytes_accessed=b * c * itemsize + b * 4 + b * 4,
    )

    per_sample = pl.pallas_call(
        functools.partial(_focal_loss_kernel, gamma=gamma, alpha=alpha,
                          epsilon=epsilon, batch=b, block_b=tb),
        out_shape=jax.ShapeDtypeStruct((b, 1), jnp.float32),
        grid=(num_tiles,),
        in_specs=[
            pl.BlockSpec((tb, c), lambda i: (i, 0)),   # logits tile (cast to f32 in-kernel)
            pl.BlockSpec((tb, 1), lambda i: (i, 0)),   # targets tile
        ],
        out_specs=pl.BlockSpec((tb, 1), lambda i: (i, 0)),
        compiler_params=pltpu.CompilerParams(
            dimension_semantics=("parallel",),
            vmem_limit_bytes=48 * 1024 * 1024),
        cost_estimate=cost,
    )(logits, tgt2d)

    # Tiny epilogue: padded rows (if any) were zeroed/never written; divide by true B.
    return jnp.sum(per_sample) / jnp.float32(b)


def focal_loss_ref(logits, target, *, gamma=2.0, alpha=0.25, epsilon=1e-9):
    # Pure-JAX reference matching the PyTorch forward (softmax branch).
    p = jax.nn.softmax(logits.astype(jnp.float32), axis=-1)
    one_hot = jax.nn.one_hot(target, logits.shape[-1], dtype=jnp.float32)
    loss = -alpha * one_hot * jnp.power(1.0 - p, gamma) * jnp.log(p + epsilon)
    return jnp.mean(jnp.sum(loss, axis=1))


if __name__ == "__main__":
    num_labels = 32
    batch = 8

    key = jax.random.PRNGKey(0)
    k_logits, k_target = jax.random.split(key)
    logits = jax.random.normal(k_logits, (batch, num_labels), dtype=jnp.float32)
    target = jax.random.randint(k_target, (batch,), 0, num_labels, dtype=jnp.int32)

    out = focal_loss(logits, target)
    out = jax.block_until_ready(out)

    ref = focal_loss_ref(logits, target)
    assert jnp.allclose(out, ref, atol=1e-5, rtol=1e-5), (out, ref)

    print("KERNEL_OK")
</pallas_src>

<mosaic_0001>
module attributes {stable_mosaic.version = 11 : i64} {
  func.func @_focal_loss_kernel(%arg0: i32, %arg1: memref<8x32xf32, #tpu.memory_space<vmem>>, %arg2: memref<8x1xi32, #tpu.memory_space<vmem>>, %arg3: memref<8x1xf32, #tpu.memory_space<vmem>>) attributes {dimension_semantics = [#tpu.dimension_semantics<parallel>], iteration_bounds = array<i64: 1>, scalar_prefetch = 0 : i64, scratch_operands = 0 : i64, tpu.core_type = #tpu.core_type<tc>, window_params = [{transform_indices = @transform_0, window_bounds = array<i64: 8, 32>}, {transform_indices = @transform_1, window_bounds = array<i64: 8, 1>}, {transform_indices = @transform_2, window_bounds = array<i64: 8, 1>}]} {
    %c0 = arith.constant 0 : index
    %c0_0 = arith.constant 0 : index
    %0 = vector.load %arg1[%c0, %c0_0] : memref<8x32xf32, #tpu.memory_space<vmem>>, vector<8x32xf32>
    %c0_1 = arith.constant 0 : index
    %c0_2 = arith.constant 0 : index
    %1 = vector.load %arg2[%c0_1, %c0_2] : memref<8x1xi32, #tpu.memory_space<vmem>>, vector<8x1xi32>
    %cst = arith.constant dense<0xFF800000> : vector<8xf32>
    %2 = vector.multi_reduction <maximumf>, %0, %cst [1] : vector<8x32xf32> to vector<8xf32>
    %3 = vector.shape_cast %2 : vector<8xf32> to vector<8x1xf32>
    %4 = vector.broadcast %3 : vector<8x1xf32> to vector<8x32xf32>
    %5 = arith.subf %0, %4 : vector<8x32xf32>
    %6 = math.exp %5 : vector<8x32xf32>
    %cst_3 = arith.constant dense<0.000000e+00> : vector<8xf32>
    %7 = vector.multi_reduction <add>, %6, %cst_3 [1] : vector<8x32xf32> to vector<8xf32>
    %8 = vector.shape_cast %7 : vector<8xf32> to vector<8x1xf32>
    %9 = tpu.iota {dimensions = array<i32: 1>} : vector<8x32xi32>
    %10 = vector.broadcast %1 : vector<8x1xi32> to vector<8x32xi32>
    %11 = arith.cmpi eq, %9, %10 : vector<8x32xi32>
    %cst_4 = arith.constant 0.000000e+00 : f32
    %12 = vector.broadcast %cst_4 : f32 to vector<8x32xf32>
    %13 = arith.select %11, %6, %12 : vector<8x32xi1>, vector<8x32xf32>
    %cst_5 = arith.constant dense<0.000000e+00> : vector<8xf32>
    %14 = vector.multi_reduction <add>, %13, %cst_5 [1] : vector<8x32xf32> to vector<8xf32>
    %15 = vector.shape_cast %14 : vector<8xf32> to vector<8x1xf32>
    %16 = arith.divf %15, %8 : vector<8x1xf32>
    %cst_6 = arith.constant 1.000000e+00 : f32
    %17 = vector.broadcast %cst_6 : f32 to vector<8x1xf32>
    %18 = arith.subf %17, %16 : vector<8x1xf32>
    %cst_7 = arith.constant 0.000000e+00 : f32
    %19 = vector.broadcast %cst_7 : f32 to vector<8x1xf32>
    %20 = arith.maximumf %18, %19 : vector<8x1xf32>
    %21 = arith.mulf %20, %20 : vector<8x1xf32>
    %cst_8 = arith.constant -2.500000e-01 : f32
    %22 = vector.broadcast %cst_8 : f32 to vector<8x1xf32>
    %23 = arith.mulf %22, %21 : vector<8x1xf32>
    %cst_9 = arith.constant 9.99999971E-10 : f32
    %24 = vector.broadcast %cst_9 : f32 to vector<8x1xf32>
    %25 = arith.addf %16, %24 : vector<8x1xf32>
    %26 = math.log %25 : vector<8x1xf32>
    %27 = arith.mulf %23, %26 : vector<8x1xf32>
    %c8_i32 = arith.constant 8 : i32
    %28 = arith.muli %arg0, %c8_i32 : i32
    %29 = tpu.iota {dimensions = array<i32: 0>} : vector<8x1xi32>
    %30 = vector.broadcast %28 : i32 to vector<8x1xi32>
    %31 = arith.addi %30, %29 : vector<8x1xi32>
    %c8_i32_10 = arith.constant 8 : i32
    %32 = vector.broadcast %c8_i32_10 : i32 to vector<8x1xi32>
    %33 = arith.cmpi slt, %31, %32 : vector<8x1xi32>
    %cst_11 = arith.constant 0.000000e+00 : f32
    %34 = vector.broadcast %cst_11 : f32 to vector<8x1xf32>
    %35 = arith.select %33, %27, %34 : vector<8x1xi1>, vector<8x1xf32>
    %c0_12 = arith.constant 0 : index
    %c0_13 = arith.constant 0 : index
    %36 = vector.load %arg3[%c0_12, %c0_13] : memref<8x1xf32, #tpu.memory_space<vmem>>, vector<8x1xf32>
    tpu.vector_store %arg3[%c0_12, %c0_13], %35 {strides = array<i32>} : memref<8x1xf32, #tpu.memory_space<vmem>>, vector<8x1xf32>,
    return
  }
  func.func @transform_0(%arg0: i32) -> (i32, i32) {
    %c0_i32 = arith.constant 0 : i32
    %c0_i32_0 = arith.constant 0 : i32
    return %arg0, %c0_i32 : i32, i32
  }
  func.func @transform_1(%arg0: i32) -> (i32, i32) {
    %c0_i32 = arith.constant 0 : i32
    %c0_i32_0 = arith.constant 0 : i32
    return %arg0, %c0_i32 : i32, i32
  }
  func.func @transform_2(%arg0: i32) -> (i32, i32) {
    %c0_i32 = arith.constant 0 : i32
    %c0_i32_0 = arith.constant 0 : i32
    return %arg0, %c0_i32 : i32, i32
  }
}

</mosaic_0001>

<bundles_post_ra>
// kernel: tpu_custom_call.1
= control target key start
LH: loop header
LB: loop body
LE: loop exit
PB: predicated region body
PF: predicated region fallthrough
CT: control target
= control target key end

     0   :  { %vm13_vm0 = vcmask 261120   ;;  %v64_v1 = vmov 0   ;;  %v23_v7 = vlaneseq  ;;  %vm50_vm2 = vcmask 7168   ;;  %s92_s0 = inlined_call_operand.vmem [shape: f32[8,32], index: 0, kind: input, shape index: {}]   ;;  %s93_s1 = inlined_call_operand.vmem [shape: s32[8,1], index: 1, kind: input, shape index: {}]   ;;  %s94_s2 = inlined_call_operand.vmem [shape: f32[8,1], index: 2, kind: output, shape index: {}]  }
   0x1   :  { %v11_v0 = vld [vmem:[%s92_s0] sm:$0xff]  ;;  %57 = vset.pattern.permute.xlu0 %v64_v1 }
   0x2   :  { %v14_v2 = vsel %vm13_vm0, %v11_v0, -inf  ;;  %v12_v3 = vld [vmem:[%s93_s1] sm:$0xff]  ;;  %v24_v8 = vand.u32 127, %v23_v7 }
   0x3   :  { %15 = vmax.xlane.f32.xlu0 %v14_v2 }
  0x19   :  { %26 = vperm.xlu0 %57, %v12_v3  }
  0x90   :  { %v16_v4 = vpop.xlane.xlu0 %15 }
  0x91   :  { %v17_v5 = vsub.f32 %v11_v0, %v16_v4 }
  0x93   :  { %v18_v6 = vmul.f32 1.442695, %v17_v5 }
  0x95   :  { %58 = vpow2.f32 %v18_v6 }
  0x98   :  { %v27_v9 = vpop.permute.xlu0 %26 }
  0x99   :  { %vm28_vm1 = vcmp.eq.s32.totalorder %v24_v8, %v27_v9 }
  0x9f   :  { %v59_v10 = vpop.eup %58 }
  0xa0   :  { %v20_v11 = vsel %vm13_vm0, %v59_v10, 0.0  ;;  %v29_v12 = vsel %vm28_vm1, %v59_v10, 0.0 }
  0xa1   :  { %21 = vadd.xlane.f32.xlu1 %v20_v11  ;;  %v30_v13 = vsel %vm13_vm0, %v29_v12, 0.0 }
  0xa5   :  { %31 = vadd.xlane.f32.xlu1 %v30_v13 }
 0x12e   :  { %v22_v14 = vpop.xlane.xlu1 %21 }
 0x12f   :  { %60 = vrcp.f32 %v22_v14 }
 0x132   :  { %v32_v16 = vpop.xlane.xlu1 %31 }
 0x139   :  { %v61_v15 = vpop.eup %60 }
 0x13a   :  { %v34_v17 = vmul.f32 %v61_v15, %v32_v16 }
 0x13c   :  { %v39_v18 = vadd.f32 1e-09, %v34_v17  ;;  %v35_v19 = vsub.f32 1.0, %v34_v17 }
 0x13e   :  { %62 = vlog2.f32 %v39_v18  ;;  %v36_v20 = vmax.f32 %v35_v19, 0.0 }
 0x140   :  { %v37_v21 = vmul.f32 %v36_v20, %v36_v20 }
 0x142   :  { %v38_v23 = vmul.f32 -0.25, %v37_v21 }
 0x148   :  { %v63_v22 = vpop.eup %62 }
 0x149   :  { %v41_v24 = vmul.f32 0.6931472, %v63_v22 }
 0x14b   :  { %v42_v25 = vmul.f32 %v41_v24, %v38_v23 }
 0x14d   :  { %51 = vst.msk [vmem:[%s94_s2] sm:$0xff] %vm50_vm2, %v42_v25 }

</bundles_post_ra>
